<compile_context>
chip_gen: v6e
topology: v6e:2x2x1
jax: 0.10.0
libtpu: 0.0.40
codegen_flags: <defaults>
</compile_context>

<pallas_src>
import functools
import math

import numpy as np
import jax
import jax.numpy as jnp
from jax.experimental import pallas as pl
from jax.experimental.pallas import tpu as pltpu


# ---------------------------------------------------------------------------
# Packed-slab layout
# ---------------------------------------------------------------------------
# Rows of the f32 vector slab (each row is H lanes wide, padded to W lanes).
(_V_B_EMB, _V_BQ, _V_BK, _V_BV, _V_BO,
 _V_G1, _V_BETA1, _V_B_FF1, _V_B_FF2, _V_G2, _V_BETA2,
 _V_B_H1, _V_W_H2, _V_B_H2) = range(14)
_V_ROWS = 14
_MASK_ROW0 = 16      # additive attention-mask rows start sublane-tile aligned

# Column order (in units of H) of the single (H, 8H) bf16 weight slab:
#   [ wq*scale | wk | wv | wo | w_ff1 | w_ff2 | w_h1 | w_emb (zero-padded) ]
_W_COLS = 8

_MXU_DTYPE = jnp.bfloat16   # MXU operands; accumulation stays f32.


# ---------------------------------------------------------------------------
# Pallas kernel: whole forward pass in one un-gridded invocation.
# All blocks are whole arrays, so the (8,128) block-shape constraint never
# triggers and no grid / pipelining machinery is needed at this size.
# ---------------------------------------------------------------------------
def _fwd_kernel(x_ref, w_ref, vec_ref, o_ref, *, batch, seq):
    hdim = w_ref.shape[0]
    n_tok = batch * seq
    eps = 1e-5

    vec = vec_ref[...]                       # (16 + N, W) f32
    w = w_ref[...]                           # (H, 8H) bf16 — single load
    w_qkv = w[:, 0 * hdim:3 * hdim]          # fused Q|K|V (scale folded into Q)
    w_o   = w[:, 3 * hdim:4 * hdim]
    w_ff1 = w[:, 4 * hdim:5 * hdim]
    w_ff2 = w[:, 5 * hdim:6 * hdim]
    w_h1  = w[:, 6 * hdim:7 * hdim]
    w_emb = w[:, 7 * hdim:8 * hdim]          # zero-padded (F,H) -> (H,H)

    def row(i):                              # (1, H) — broadcasts over (N, H)
        return vec[i:i + 1, 0:hdim]

    def mm(a, w_bf16):                       # bf16 MXU operands, f32 accumulation
        return jnp.dot(a.astype(_MXU_DTYPE), w_bf16,
                       preferred_element_type=jnp.float32)

    def layernorm(h, gamma, beta):           # over last dim, f32 VPU math
        mu = jnp.mean(h, axis=-1, keepdims=True)
        var = jnp.mean((h - mu) * (h - mu), axis=-1, keepdims=True)
        return (h - mu) * jax.lax.rsqrt(var + eps) * gamma + beta

    # --- input projection: (N, H) @ (H, H) -> (N, H) --------------------------
    # x was zero-padded (N, F) -> (N, H) in the wrapper; padded rows of the
    # packed w_emb slice only ever multiply zeros, so the result is unchanged.
    h = mm(x_ref[...], w_emb) + row(_V_B_EMB)

    # --- fused QKV: one (N, H) @ (H, 3H) matmul --------------------------------
    qkv = mm(h, w_qkv)                                        # (N, 3H) f32
    q = qkv[:, 0 * hdim:1 * hdim] + row(_V_BQ)                # scale pre-folded
    k = qkv[:, 1 * hdim:2 * hdim] + row(_V_BK)
    v = qkv[:, 2 * hdim:3 * hdim] + row(_V_BV)

    # --- single-head self-attention, fused across the batch -------------------
    scores = jax.lax.dot_general(
        q.astype(_MXU_DTYPE), k.astype(_MXU_DTYPE),
        (((1,), (1,)), ((), ())),
        preferred_element_type=jnp.float32)                   # (N, N)
    # Additive block-diagonal mask (0 on-block / -1e30 off-block), precomputed
    # at pack time and stored in the spare rows of the f32 vector slab.
    scores = scores + vec[_MASK_ROW0:_MASK_ROW0 + n_tok, 0:n_tok]

    scores = scores - jnp.max(scores, axis=-1, keepdims=True)
    p = jnp.exp(scores)
    # approx=True uses the EUP reciprocal (separate slot, near-free); switch to
    # approx=False if bit-level parity with an f32 reference is required.
    p = p * pl.reciprocal(jnp.sum(p, axis=-1, keepdims=True), approx=True)

    attn = jnp.dot(p.astype(_MXU_DTYPE), v.astype(_MXU_DTYPE),
                   preferred_element_type=jnp.float32)        # (N, H)
    attn = mm(attn, w_o) + row(_V_BO)

    h = layernorm(h + attn, row(_V_G1), row(_V_BETA1))

    # --- position-wise feed-forward --------------------------------------------
    ff = jnp.maximum(mm(h, w_ff1) + row(_V_B_FF1), 0.0)
    ff = mm(ff, w_ff2) + row(_V_B_FF2)
    h = layernorm(h + ff, row(_V_G2), row(_V_BETA2))

    # --- mean-pool over the sequence: per-batch sublane reductions -------------
    # (replaces the previous f32 pool matmul + iota pool-matrix construction).
    pooled = jnp.concatenate(
        [jnp.sum(h[b * seq:(b + 1) * seq, :], axis=0, keepdims=True)
         for b in range(batch)], axis=0) * (1.0 / seq)        # (B, H) f32

    # --- head: Linear(H,H) -> ReLU -> Dropout(identity) -> Linear(H,1) ---------
    z = jnp.maximum(mm(pooled, w_h1) + row(_V_B_H1), 0.0)     # (B, H)
    # Final Linear(H, 1) as a VPU multiply + lane reduce (no 1-lane MXU pop).
    y = jnp.sum(z * row(_V_W_H2), axis=-1, keepdims=True)
    y = y + vec[_V_B_H2:_V_B_H2 + 1, 0:1]                     # (B, 1)

    o_ref[...] = y.astype(o_ref.dtype)


# ---------------------------------------------------------------------------
# Parameter initialization (deterministic, xavier-uniform like the module).
# ---------------------------------------------------------------------------
def _xavier_uniform(key, fan_in, fan_out):
    bound = math.sqrt(6.0 / (fan_in + fan_out))
    return jax.random.uniform(key, (fan_in, fan_out), jnp.float32, -bound, bound)


def init_params(key, num_features, hidden_dim):
    H, F = hidden_dim, num_features
    ks = jax.random.split(key, 16)
    return {
        "w_emb": _xavier_uniform(ks[0], F, H), "b_emb": jnp.zeros((1, H), jnp.float32),
        "wq": _xavier_uniform(ks[1], H, H), "bq": jnp.zeros((1, H), jnp.float32),
        "wk": _xavier_uniform(ks[2], H, H), "bk": jnp.zeros((1, H), jnp.float32),
        "wv": _xavier_uniform(ks[3], H, H), "bv": jnp.zeros((1, H), jnp.float32),
        "wo": _xavier_uniform(ks[4], H, H), "bo": jnp.zeros((1, H), jnp.float32),
        "g1": jnp.ones((1, H), jnp.float32), "beta1": jnp.zeros((1, H), jnp.float32),
        "w_ff1": _xavier_uniform(ks[5], H, H), "b_ff1": jnp.zeros((1, H), jnp.float32),
        "w_ff2": _xavier_uniform(ks[6], H, H), "b_ff2": jnp.zeros((1, H), jnp.float32),
        "g2": jnp.ones((1, H), jnp.float32), "beta2": jnp.zeros((1, H), jnp.float32),
        "w_h1": _xavier_uniform(ks[7], H, H), "b_h1": jnp.zeros((1, H), jnp.float32),
        "w_h2": _xavier_uniform(ks[8], H, 1), "b_h2": jnp.zeros((1, 1), jnp.float32),
    }


def pack_params(params, hidden_dim, batch, seq):
    """Pack all 22 parameter arrays (plus the attention mask) into 2 slabs.

      w_mat (H, 8H)   bf16 : [wq*scale | wk | wv | wo | w_ff1 | w_ff2 | w_h1 | w_emb(pad)]
      vecs  (16+N, W) f32  : 14 bias / LN / head vectors, then the (N, N)
                             additive block-diagonal attention mask.
    """
    H, N = hidden_dim, batch * seq
    W = max(H, N)
    scale = 1.0 / math.sqrt(H)                    # attention scale folded into Q
    F = params["w_emb"].shape[0]
    assert F <= H, "packed embedding slice assumes num_features <= hidden_dim"

    w_emb_pad = jnp.zeros((H, H), jnp.float32).at[:F, :].set(params["w_emb"])
    w_mat = jnp.concatenate([
        params["wq"] * scale, params["wk"], params["wv"],      # fused QKV cols [0:3H)
        params["wo"], params["w_ff1"], params["w_ff2"],
        params["w_h1"], w_emb_pad,
    ], axis=1).astype(_MXU_DTYPE)                              # (H, 8H) bf16

    rows = jnp.stack([
        params["b_emb"].reshape(H),
        (params["bq"] * scale).reshape(H),
        params["bk"].reshape(H), params["bv"].reshape(H), params["bo"].reshape(H),
        params["g1"].reshape(H), params["beta1"].reshape(H),
        params["b_ff1"].reshape(H), params["b_ff2"].reshape(H),
        params["g2"].reshape(H), params["beta2"].reshape(H),
        params["b_h1"].reshape(H),
        params["w_h2"].reshape(H),
        jnp.full((H,), params["b_h2"][0, 0], jnp.float32),
    ])                                                         # (14, H) f32
    assert rows.shape[0] == _V_ROWS
    rows = jnp.pad(rows, ((0, _MASK_ROW0 - _V_ROWS), (0, W - H)))   # (16, W)

    # Additive block-diagonal mask, built once at pack time (no in-kernel iotas).
    blk = np.arange(N) // seq
    mask = np.where(blk[:, None] == blk[None, :], 0.0, -1e30).astype(np.float32)
    mask = jnp.asarray(np.pad(mask, ((0, 0), (0, W - N))))          # (N, W)

    vecs = jnp.concatenate([rows, mask], axis=0)               # (16 + N, W) f32
    return w_mat, vecs


# ---------------------------------------------------------------------------
# Wrapper
# ---------------------------------------------------------------------------
@jax.jit
def cache_replacement_transformer_fwd(x, packed):
    """x: (B, S, F) f32 -> (B, 1) f32."""
    w_mat, vecs = packed
    B, S, F = x.shape
    H = w_mat.shape[0]
    assert w_mat.shape[1] == _W_COLS * H
    assert vecs.shape[0] == _MASK_ROW0 + B * S, "pack_params batch/seq mismatch"
    assert F <= H

    # Flatten (B, S) -> N and zero-pad features to H so the input projection
    # uses the packed (H, H) embedding slice (the padding only multiplies zeros).
    x2 = jnp.pad(x.reshape(B * S, F), ((0, 0), (0, H - F)))

    kernel = functools.partial(_fwd_kernel, batch=B, seq=S)
    vmem = pl.BlockSpec(memory_space=pltpu.MemorySpace.VMEM)
    # Single un-gridded call, whole-array VMEM blocks, 3 input DMAs + 1 output.
    return pl.pallas_call(
        kernel,
        out_shape=jax.ShapeDtypeStruct((B, 1), jnp.float32),
        in_specs=[vmem, vmem, vmem],
        out_specs=vmem,
    )(x2, w_mat, vecs)


# ---------------------------------------------------------------------------
# Pure-JAX reference (mirrors the kernel's bf16-operand / f32-accumulate math).
# ---------------------------------------------------------------------------
def _reference_fwd(x, params, hidden_dim):
    H = hidden_dim
    scale = 1.0 / math.sqrt(H)
    bf = lambda a: a.astype(_MXU_DTYPE)
    mm = lambda a, w: jnp.dot(bf(a), bf(w), preferred_element_type=jnp.float32)

    def ln(h, g, b):
        mu = jnp.mean(h, -1, keepdims=True)
        var = jnp.mean((h - mu) ** 2, -1, keepdims=True)
        return (h - mu) * jax.lax.rsqrt(var + 1e-5) * g + b

    h = mm(x, params["w_emb"]) + params["b_emb"]                       # (B,S,H)
    q = mm(h, params["wq"] * scale) + params["bq"] * scale
    k = mm(h, params["wk"]) + params["bk"]
    v = mm(h, params["wv"]) + params["bv"]
    s = jnp.einsum("bqh,bkh->bqk", bf(q), bf(k),
                   preferred_element_type=jnp.float32)
    p = jax.nn.softmax(s, axis=-1)
    attn = jnp.einsum("bqk,bkh->bqh", bf(p), bf(v),
                      preferred_element_type=jnp.float32)
    attn = mm(attn, params["wo"]) + params["bo"]
    h = ln(h + attn, params["g1"], params["beta1"])
    ff = jax.nn.relu(mm(h, params["w_ff1"]) + params["b_ff1"])
    ff = mm(ff, params["w_ff2"]) + params["b_ff2"]
    h = ln(h + ff, params["g2"], params["beta2"])
    pooled = jnp.mean(h, axis=1)                                       # (B,H)
    z = jax.nn.relu(mm(pooled, params["w_h1"]) + params["b_h1"])
    return jnp.dot(z, params["w_h2"]) + params["b_h2"]                 # (B,1)


if __name__ == "__main__":
    # Small shapes consistent with the module: batch=2, seq=8, num_features=4,
    # hidden_dim=32.
    B, S, F, H = 2, 8, 4, 32
    key = jax.random.PRNGKey(0)
    k_x, k_p = jax.random.split(key)
    x = jax.random.normal(k_x, (B, S, F), jnp.float32)

    params = init_params(k_p, F, H)
    packed = pack_params(params, H, B, S)

    out = cache_replacement_transformer_fwd(x, packed)
    out = jax.block_until_ready(out)
    assert out.shape == (B, 1) and out.dtype == jnp.float32

    ref = _reference_fwd(x, params, H)
    max_err = float(jnp.max(jnp.abs(out - ref)))
    assert max_err < 2e-2, f"kernel/reference mismatch: max |diff| = {max_err}"

    print("KERNEL_OK")
</pallas_src>

<mosaic_0001>
module attributes {stable_mosaic.version = 11 : i64} {
  func.func @_fwd_kernel(%arg0: memref<16x32xf32, #tpu.memory_space<vmem>>, %arg1: memref<32x256xbf16, #tpu.memory_space<vmem>>, %arg2: memref<32x32xf32, #tpu.memory_space<vmem>>, %arg3: memref<2x1xf32, #tpu.memory_space<vmem>>) attributes {dimension_semantics = [], scalar_prefetch = 0 : i64, scratch_operands = 0 : i64, tpu.core_type = #tpu.core_type<tc>} {
    %c0 = arith.constant 0 : index
    %c0_0 = arith.constant 0 : index
    %0 = vector.load %arg2[%c0, %c0_0] : memref<32x32xf32, #tpu.memory_space<vmem>>, vector<32x32xf32>
    %c0_1 = arith.constant 0 : index
    %c0_2 = arith.constant 0 : index
    %1 = vector.load %arg1[%c0_1, %c0_2] : memref<32x256xbf16, #tpu.memory_space<vmem>>, vector<32x256xbf16>
    %2 = vector.extract_strided_slice %1 {offsets = [0, 0], sizes = [32, 96], strides = [1, 1]} : vector<32x256xbf16> to vector<32x96xbf16>
    %3 = vector.extract_strided_slice %1 {offsets = [0, 96], sizes = [32, 32], strides = [1, 1]} : vector<32x256xbf16> to vector<32x32xbf16>
    %4 = vector.extract_strided_slice %1 {offsets = [0, 128], sizes = [32, 32], strides = [1, 1]} : vector<32x256xbf16> to vector<32x32xbf16>
    %5 = vector.extract_strided_slice %1 {offsets = [0, 160], sizes = [32, 32], strides = [1, 1]} : vector<32x256xbf16> to vector<32x32xbf16>
    %6 = vector.extract_strided_slice %1 {offsets = [0, 192], sizes = [32, 32], strides = [1, 1]} : vector<32x256xbf16> to vector<32x32xbf16>
    %7 = vector.extract_strided_slice %1 {offsets = [0, 224], sizes = [32, 32], strides = [1, 1]} : vector<32x256xbf16> to vector<32x32xbf16>
    %c0_3 = arith.constant 0 : index
    %c0_4 = arith.constant 0 : index
    %8 = vector.load %arg0[%c0_3, %c0_4] : memref<16x32xf32, #tpu.memory_space<vmem>>, vector<16x32xf32>
    %9 = arith.truncf %8 : vector<16x32xf32> to vector<16x32xbf16>
    %cst = arith.constant dense<0.000000e+00> : vector<16x32xf32>
    %10 = tpu.matmul %9, %7, %cst {dimension_numbers = #tpu.dot_dimension_numbers<[1], [0], [0], [1], [0, 0, 1, 1], [], []>} : vector<16x32xbf16>, vector<32x32xbf16>, vector<16x32xf32> -> vector<16x32xf32>
    %11 = vector.extract_strided_slice %0 {offsets = [0, 0], sizes = [1, 32], strides = [1, 1]} : vector<32x32xf32> to vector<1x32xf32>
    %12 = vector.broadcast %11 : vector<1x32xf32> to vector<16x32xf32>
    %13 = arith.addf %10, %12 : vector<16x32xf32>
    %14 = arith.truncf %13 : vector<16x32xf32> to vector<16x32xbf16>
    %cst_5 = arith.constant dense<0.000000e+00> : vector<16x96xf32>
    %15 = tpu.matmul %14, %2, %cst_5 {dimension_numbers = #tpu.dot_dimension_numbers<[1], [0], [0], [1], [0, 0, 1, 1], [], []>} : vector<16x32xbf16>, vector<32x96xbf16>, vector<16x96xf32> -> vector<16x96xf32>
    %16 = vector.extract_strided_slice %15 {offsets = [0, 0], sizes = [16, 32], strides = [1, 1]} : vector<16x96xf32> to vector<16x32xf32>
    %17 = vector.extract_strided_slice %0 {offsets = [1, 0], sizes = [1, 32], strides = [1, 1]} : vector<32x32xf32> to vector<1x32xf32>
    %18 = vector.broadcast %17 : vector<1x32xf32> to vector<16x32xf32>
    %19 = arith.addf %16, %18 : vector<16x32xf32>
    %20 = vector.extract_strided_slice %15 {offsets = [0, 32], sizes = [16, 32], strides = [1, 1]} : vector<16x96xf32> to vector<16x32xf32>
    %21 = vector.extract_strided_slice %0 {offsets = [2, 0], sizes = [1, 32], strides = [1, 1]} : vector<32x32xf32> to vector<1x32xf32>
    %22 = vector.broadcast %21 : vector<1x32xf32> to vector<16x32xf32>
    %23 = arith.addf %20, %22 : vector<16x32xf32>
    %24 = vector.extract_strided_slice %15 {offsets = [0, 64], sizes = [16, 32], strides = [1, 1]} : vector<16x96xf32> to vector<16x32xf32>
    %25 = vector.extract_strided_slice %0 {offsets = [3, 0], sizes = [1, 32], strides = [1, 1]} : vector<32x32xf32> to vector<1x32xf32>
    %26 = vector.broadcast %25 : vector<1x32xf32> to vector<16x32xf32>
    %27 = arith.addf %24, %26 : vector<16x32xf32>
    %28 = arith.truncf %19 : vector<16x32xf32> to vector<16x32xbf16>
    %29 = arith.truncf %23 : vector<16x32xf32> to vector<16x32xbf16>
    %cst_6 = arith.constant dense<0.000000e+00> : vector<16x16xf32>
    %30 = tpu.matmul %28, %29, %cst_6 {dimension_numbers = #tpu.dot_dimension_numbers<[1], [1], [0], [0], [0, 0, 1, 0], [], []>} : vector<16x32xbf16>, vector<16x32xbf16>, vector<16x16xf32> -> vector<16x16xf32>
    %31 = vector.extract_strided_slice %0 {offsets = [16, 0], sizes = [16, 16], strides = [1, 1]} : vector<32x32xf32> to vector<16x16xf32>
    %32 = arith.addf %30, %31 : vector<16x16xf32>
    %cst_7 = arith.constant dense<0xFF800000> : vector<16xf32>
    %33 = vector.multi_reduction <maximumf>, %32, %cst_7 [1] : vector<16x16xf32> to vector<16xf32>
    %34 = vector.shape_cast %33 : vector<16xf32> to vector<16x1xf32>
    %35 = vector.broadcast %34 : vector<16x1xf32> to vector<16x16xf32>
    %36 = arith.subf %32, %35 : vector<16x16xf32>
    %37 = math.exp %36 : vector<16x16xf32>
    %cst_8 = arith.constant dense<0.000000e+00> : vector<16xf32>
    %38 = vector.multi_reduction <add>, %37, %cst_8 [1] : vector<16x16xf32> to vector<16xf32>
    %39 = vector.shape_cast %38 : vector<16xf32> to vector<16x1xf32>
    %40 = tpu.reciprocal %39 {approx = true} : vector<16x1xf32> -> vector<16x1xf32>
    %41 = vector.broadcast %40 : vector<16x1xf32> to vector<16x16xf32>
    %42 = arith.mulf %37, %41 : vector<16x16xf32>
    %43 = arith.truncf %42 : vector<16x16xf32> to vector<16x16xbf16>
    %44 = arith.truncf %27 : vector<16x32xf32> to vector<16x32xbf16>
    %cst_9 = arith.constant dense<0.000000e+00> : vector<16x32xf32>
    %45 = tpu.matmul %43, %44, %cst_9 {dimension_numbers = #tpu.dot_dimension_numbers<[1], [0], [0], [1], [0, 0, 1, 1], [], []>} : vector<16x16xbf16>, vector<16x32xbf16>, vector<16x32xf32> -> vector<16x32xf32>
    %46 = arith.truncf %45 : vector<16x32xf32> to vector<16x32xbf16>
    %cst_10 = arith.constant dense<0.000000e+00> : vector<16x32xf32>
    %47 = tpu.matmul %46, %3, %cst_10 {dimension_numbers = #tpu.dot_dimension_numbers<[1], [0], [0], [1], [0, 0, 1, 1], [], []>} : vector<16x32xbf16>, vector<32x32xbf16>, vector<16x32xf32> -> vector<16x32xf32>
    %48 = vector.extract_strided_slice %0 {offsets = [4, 0], sizes = [1, 32], strides = [1, 1]} : vector<32x32xf32> to vector<1x32xf32>
    %49 = vector.broadcast %48 : vector<1x32xf32> to vector<16x32xf32>
    %50 = arith.addf %47, %49 : vector<16x32xf32>
    %51 = arith.addf %13, %50 : vector<16x32xf32>
    %52 = vector.extract_strided_slice %0 {offsets = [5, 0], sizes = [1, 32], strides = [1, 1]} : vector<32x32xf32> to vector<1x32xf32>
    %53 = vector.extract_strided_slice %0 {offsets = [6, 0], sizes = [1, 32], strides = [1, 1]} : vector<32x32xf32> to vector<1x32xf32>
    %cst_11 = arith.constant dense<0.000000e+00> : vector<16xf32>
    %54 = vector.multi_reduction <add>, %51, %cst_11 [1] : vector<16x32xf32> to vector<16xf32>
    %55 = vector.shape_cast %54 : vector<16xf32> to vector<16x1xf32>
    %cst_12 = arith.constant 3.200000e+01 : f32
    %56 = vector.broadcast %cst_12 : f32 to vector<16x1xf32>
    %57 = arith.divf %55, %56 : vector<16x1xf32>
    %58 = vector.broadcast %57 : vector<16x1xf32> to vector<16x32xf32>
    %59 = arith.subf %51, %58 : vector<16x32xf32>
    %60 = vector.broadcast %57 : vector<16x1xf32> to vector<16x32xf32>
    %61 = arith.subf %51, %60 : vector<16x32xf32>
    %62 = arith.mulf %59, %61 : vector<16x32xf32>
    %cst_13 = arith.constant dense<0.000000e+00> : vector<16xf32>
    %63 = vector.multi_reduction <add>, %62, %cst_13 [1] : vector<16x32xf32> to vector<16xf32>
    %64 = vector.shape_cast %63 : vector<16xf32> to vector<16x1xf32>
    %cst_14 = arith.constant 3.200000e+01 : f32
    %65 = vector.broadcast %cst_14 : f32 to vector<16x1xf32>
    %66 = arith.divf %64, %65 : vector<16x1xf32>
    %67 = vector.broadcast %57 : vector<16x1xf32> to vector<16x32xf32>
    %68 = arith.subf %51, %67 : vector<16x32xf32>
    %cst_15 = arith.constant 9.99999974E-6 : f32
    %69 = vector.broadcast %cst_15 : f32 to vector<16x1xf32>
    %70 = arith.addf %66, %69 : vector<16x1xf32>
    %71 = math.rsqrt %70 : vector<16x1xf32>
    %72 = vector.broadcast %71 : vector<16x1xf32> to vector<16x32xf32>
    %73 = arith.mulf %68, %72 : vector<16x32xf32>
    %74 = vector.broadcast %52 : vector<1x32xf32> to vector<16x32xf32>
    %75 = arith.mulf %73, %74 : vector<16x32xf32>
    %76 = vector.broadcast %53 : vector<1x32xf32> to vector<16x32xf32>
    %77 = arith.addf %75, %76 : vector<16x32xf32>
    %78 = arith.truncf %77 : vector<16x32xf32> to vector<16x32xbf16>
    %cst_16 = arith.constant dense<0.000000e+00> : vector<16x32xf32>
    %79 = tpu.matmul %78, %4, %cst_16 {dimension_numbers = #tpu.dot_dimension_numbers<[1], [0], [0], [1], [0, 0, 1, 1], [], []>} : vector<16x32xbf16>, vector<32x32xbf16>, vector<16x32xf32> -> vector<16x32xf32>
    %80 = vector.extract_strided_slice %0 {offsets = [7, 0], sizes = [1, 32], strides = [1, 1]} : vector<32x32xf32> to vector<1x32xf32>
    %81 = vector.broadcast %80 : vector<1x32xf32> to vector<16x32xf32>
    %82 = arith.addf %79, %81 : vector<16x32xf32>
    %cst_17 = arith.constant 0.000000e+00 : f32
    %83 = vector.broadcast %cst_17 : f32 to vector<16x32xf32>
    %84 = arith.maximumf %82, %83 : vector<16x32xf32>
    %85 = arith.truncf %84 : vector<16x32xf32> to vector<16x32xbf16>
    %cst_18 = arith.constant dense<0.000000e+00> : vector<16x32xf32>
    %86 = tpu.matmul %85, %5, %cst_18 {dimension_numbers = #tpu.dot_dimension_numbers<[1], [0], [0], [1], [0, 0, 1, 1], [], []>} : vector<16x32xbf16>, vector<32x32xbf16>, vector<16x32xf32> -> vector<16x32xf32>
    %87 = vector.extract_strided_slice %0 {offsets = [8, 0], sizes = [1, 32], strides = [1, 1]} : vector<32x32xf32> to vector<1x32xf32>
    %88 = vector.broadcast %87 : vector<1x32xf32> to vector<16x32xf32>
    %89 = arith.addf %86, %88 : vector<16x32xf32>
    %90 = arith.addf %77, %89 : vector<16x32xf32>
    %91 = vector.extract_strided_slice %0 {offsets = [9, 0], sizes = [1, 32], strides = [1, 1]} : vector<32x32xf32> to vector<1x32xf32>
    %92 = vector.extract_strided_slice %0 {offsets = [10, 0], sizes = [1, 32], strides = [1, 1]} : vector<32x32xf32> to vector<1x32xf32>
    %cst_19 = arith.constant dense<0.000000e+00> : vector<16xf32>
    %93 = vector.multi_reduction <add>, %90, %cst_19 [1] : vector<16x32xf32> to vector<16xf32>
    %94 = vector.shape_cast %93 : vector<16xf32> to vector<16x1xf32>
    %cst_20 = arith.constant 3.200000e+01 : f32
    %95 = vector.broadcast %cst_20 : f32 to vector<16x1xf32>
    %96 = arith.divf %94, %95 : vector<16x1xf32>
    %97 = vector.broadcast %96 : vector<16x1xf32> to vector<16x32xf32>
    %98 = arith.subf %90, %97 : vector<16x32xf32>
    %99 = vector.broadcast %96 : vector<16x1xf32> to vector<16x32xf32>
    %100 = arith.subf %90, %99 : vector<16x32xf32>
    %101 = arith.mulf %98, %100 : vector<16x32xf32>
    %cst_21 = arith.constant dense<0.000000e+00> : vector<16xf32>
    %102 = vector.multi_reduction <add>, %101, %cst_21 [1] : vector<16x32xf32> to vector<16xf32>
    %103 = vector.shape_cast %102 : vector<16xf32> to vector<16x1xf32>
    %cst_22 = arith.constant 3.200000e+01 : f32
    %104 = vector.broadcast %cst_22 : f32 to vector<16x1xf32>
    %105 = arith.divf %103, %104 : vector<16x1xf32>
    %106 = vector.broadcast %96 : vector<16x1xf32> to vector<16x32xf32>
    %107 = arith.subf %90, %106 : vector<16x32xf32>
    %cst_23 = arith.constant 9.99999974E-6 : f32
    %108 = vector.broadcast %cst_23 : f32 to vector<16x1xf32>
    %109 = arith.addf %105, %108 : vector<16x1xf32>
    %110 = math.rsqrt %109 : vector<16x1xf32>
    %111 = vector.broadcast %110 : vector<16x1xf32> to vector<16x32xf32>
    %112 = arith.mulf %107, %111 : vector<16x32xf32>
    %113 = vector.broadcast %91 : vector<1x32xf32> to vector<16x32xf32>
    %114 = arith.mulf %112, %113 : vector<16x32xf32>
    %115 = vector.broadcast %92 : vector<1x32xf32> to vector<16x32xf32>
    %116 = arith.addf %114, %115 : vector<16x32xf32>
    %117 = vector.extract_strided_slice %116 {offsets = [0, 0], sizes = [8, 32], strides = [1, 1]} : vector<16x32xf32> to vector<8x32xf32>
    %cst_24 = arith.constant dense<0.000000e+00> : vector<32xf32>
    %118 = vector.multi_reduction <add>, %117, %cst_24 [0] : vector<8x32xf32> to vector<32xf32>
    %119 = vector.shape_cast %118 : vector<32xf32> to vector<1x32xf32>
    %120 = vector.extract_strided_slice %116 {offsets = [8, 0], sizes = [8, 32], strides = [1, 1]} : vector<16x32xf32> to vector<8x32xf32>
    %cst_25 = arith.constant dense<0.000000e+00> : vector<32xf32>
    %121 = vector.multi_reduction <add>, %120, %cst_25 [0] : vector<8x32xf32> to vector<32xf32>
    %122 = vector.shape_cast %121 : vector<32xf32> to vector<1x32xf32>
    %123 = tpu.concatenate %119, %122 in 0 : vector<1x32xf32>, vector<1x32xf32> -> vector<2x32xf32>
    %cst_26 = arith.constant 1.250000e-01 : f32
    %124 = vector.broadcast %cst_26 : f32 to vector<2x32xf32>
    %125 = arith.mulf %123, %124 : vector<2x32xf32>
    %126 = arith.truncf %125 : vector<2x32xf32> to vector<2x32xbf16>
    %cst_27 = arith.constant dense<0.000000e+00> : vector<2x32xf32>
    %127 = tpu.matmul %126, %6, %cst_27 {dimension_numbers = #tpu.dot_dimension_numbers<[1], [0], [0], [1], [0, 0, 1, 1], [], []>} : vector<2x32xbf16>, vector<32x32xbf16>, vector<2x32xf32> -> vector<2x32xf32>
    %128 = vector.extract_strided_slice %0 {offsets = [11, 0], sizes = [1, 32], strides = [1, 1]} : vector<32x32xf32> to vector<1x32xf32>
    %129 = vector.broadcast %128 : vector<1x32xf32> to vector<2x32xf32>
    %130 = arith.addf %127, %129 : vector<2x32xf32>
    %cst_28 = arith.constant 0.000000e+00 : f32
    %131 = vector.broadcast %cst_28 : f32 to vector<2x32xf32>
    %132 = arith.maximumf %130, %131 : vector<2x32xf32>
    %133 = vector.extract_strided_slice %0 {offsets = [12, 0], sizes = [1, 32], strides = [1, 1]} : vector<32x32xf32> to vector<1x32xf32>
    %134 = vector.broadcast %133 : vector<1x32xf32> to vector<2x32xf32>
    %135 = arith.mulf %132, %134 : vector<2x32xf32>
    %cst_29 = arith.constant dense<0.000000e+00> : vector<2xf32>
    %136 = vector.multi_reduction <add>, %135, %cst_29 [1] : vector<2x32xf32> to vector<2xf32>
    %137 = vector.shape_cast %136 : vector<2xf32> to vector<2x1xf32>
    %138 = vector.extract_strided_slice %0 {offsets = [13, 0], sizes = [1, 1], strides = [1, 1]} : vector<32x32xf32> to vector<1x1xf32>
    %139 = vector.broadcast %138 : vector<1x1xf32> to vector<2x1xf32>
    %140 = arith.addf %137, %139 : vector<2x1xf32>
    %c0_30 = arith.constant 0 : index
    %c0_31 = arith.constant 0 : index
    %141 = vector.load %arg3[%c0_30, %c0_31] : memref<2x1xf32, #tpu.memory_space<vmem>>, vector<2x1xf32>
    tpu.vector_store %arg3[%c0_30, %c0_31], %140 {strides = array<i32>} : memref<2x1xf32, #tpu.memory_space<vmem>>, vector<2x1xf32>,
    return
  }
}

</mosaic_0001>

<bundles_post_ra>
// kernel: cache_replacement_transformer_fwd.1
= control target key start
LH: loop header
LB: loop body
LE: loop exit
PB: predicated region body
PF: predicated region fallthrough
CT: control target
= control target key end

     0   :  { %8 = vsyncpa [#allocation3], 0  ;;  %s792_s12 = smov [#allocation2]   ;;  %s981_s0 = inlined_call_operand.vmem [shape: f32[16,32], index: 0, kind: input, shape index: {}]   ;;  %s982_s1 = inlined_call_operand.vmem [shape: bf16[32,256], index: 1, kind: input, shape index: {}]   ;;  %s983_s2 = inlined_call_operand.hbm [shape: f32[32,32], index: 2, kind: input, shape index: {}]   ;;  %s984_s3 = inlined_call_operand.vmem [shape: f32[2,1], index: 3, kind: output, shape index: {}]  }
   0x1   :  { %s18_s13 = sshll.u32 %s792_s12, 4  ;;  %s19_s13 = int_to_ptr.vmem [resolvable:$true] %s18_s13 }
   0x2   :  { %s778_s14 = scalar_lea.vmem %s19_s13, 512  ;;  %p783_p1 = scmp.lt.s32.totalorder %s19_s13, %s19_s13 }
   0x3   :  { %p779_p0 = scmp.ne.s32.totalorder %s19_s13, %s778_s14  ;;  %p784_p2 = scmp.lt.s32.totalorder %s778_s14, %s778_s14 }
   0x5   :  { %p785_p3 = por %p784_p2, %p783_p1 }
   0x7   :  { %p786_p4 = pnand %p785_p3, %p779_p0 }
   0x9   :  { %789 = shalt.err (!%p786_p4)
}
   0xa   :  { %s793_s15 = smov 128   ;;  %s794_s16 = smov 8  }
   0xb   :  { %24 = dma.hbm_to_vmem [thread:$0]  %s983_s2, 512, %s19_s13, [#allocation3], %s793_s15, %s793_s15, %s794_s16  }
   0xc   :  { %790 = dma.done.wait [#allocation3], 512  }
   0xd   :  { %791 = vsyncadd [#allocation3], 4294966784  ;;  %v795_v0 = vmov 0.0   ;;  %vm796_vm0 = vmmov 0   ;;  %v832_v1 = vld [vmem:[%s982_s1 + $0x14] ss:$8 sps:$4 sm:$0xff]   ;;  %v40_v9 = vlaneseq }
   0xe   :  { %680 = vmatprep.subr.bf16.mxu0 %v795_v0  ;;  %684 = vmatprep.mubr.msk.bf16.mxu0 %vm796_vm0, %v795_v0  ;;  %s797_s2 = smov 32   ;;  %v839_v2 = vld [vmem:[%s982_s1 + $0x4] ss:$8 sps:$4 sm:$0xff]   ;;  %vm60_vm1 = vcmask 261120   ;;  %v752_v8 = vld [vmem:[%s982_s1 + $0x10] ss:$8 sps:$4 sm:$0xff]  }
   0xf   :  { %688 = vmatprep.subr.bf16.mxu1 %v795_v0  ;;  %692 = vmatprep.mubr.msk.bf16.mxu1 %vm796_vm0, %v795_v0  ;;  %v37_v4 = vld [vmem:[%s981_s0] sm:$0xff]  ;;  %v38_v5 = vld [vmem:[%s981_s0 + $0x8] sm:$0xff]  ;;  %v861_v11 = vshrl.u32 %v40_v9, 7  ;;  %v31_v39 = vld [vmem:[#allocation2 + $0x10] sm:$0xff]  ;;  %vm236_vm2 = vcmask 130048   ;;  %s799_s30 = smov 64  }
  0x10   :  { %56 = vrot.lane.b32.xlu0 %v832_v1, %s797_s2  ;;  %v39_v7 = vpack.c.bf16 %v38_v5, %v37_v4  ;;  %689 = vmatpush3.bf16.msra.mxu1 %v752_v8  ;;  %v753_v10 = vld [vmem:[%s982_s1] ss:$8 sps:$4 sm:$0xff]   ;;  %s798_s1 = smov 96   ;;  %v32_v43 = vld [vmem:[#allocation2 + $0x18] sm:$0xff]  ;;  %vm567_vm3 = vcmask 1040384   ;;  %vm630_vm4 = vcmask 254976  }
  0x11   :  { %690 = vmatprep.subr.bf16.mxu1 %v795_v0  ;;  %v166_v12 = vsub.s32 2, %v861_v11  ;;  %v865_v13 = vld [vmem:[#allocation2] sm:$0xff]  ;;  %v42_v15 = vsub.s32 0, %v861_v11  ;;  %v160_v32 = vsub.s32 1, %v861_v11  ;;  %v176_v49 = vsub.s32 3, %v861_v11 }
  0x12   :  { %vm639_vm5 = vcmask 1024  }
  0x13   :  { %v167_v14 = vrot.slane %v865_v13, %v166_v12  ;;  %v43_v17 = vrot.slane %v865_v13, %v42_v15  ;;  %v161_v34 = vrot.slane %v865_v13, %v160_v32  ;;  %v177_v50 = vrot.slane %v865_v13, %v176_v49 }
  0x14   :  { %54 = vrot.lane.b32.xlu0 %v839_v2, %s797_s2  ;;  %691 = vmatpush3.bf16.msra.mxu1 %v753_v10 }
  0x15   :  { %702 = vmatprep.subr.bf16.mxu1 %v795_v0  ;;  %169 = vrot.lane.b32.xlu1 %v167_v14, %s797_s2 }
  0x82   :  { %v57_v3 = vpop.permute.xlu0 %56 }
  0x83   :  { %681 = vmatpush3.bf16.msra.mxu0 %v57_v3 }
  0x84   :  { %682 = vmatprep.subr.bf16.mxu0 %v795_v0 }
  0x86   :  { %v55_v6 = vpop.permute.xlu0 %54 }
  0x87   :  { %683 = vmatpush3.bf16.msra.mxu0 %v55_v6  ;;  %v170_v25 = vpop.permute.xlu1 %169 }
  0x88   :  { %696 = vmatprep.subr.bf16.mxu0 %v795_v0 }
  0x8a   :  { %685 = vmatmul.mubr.msk.bf16.vlgmr.msra.gmra.mxu0 %vm60_vm1, %v39_v7 }
  0x8b   :  { %698 = vmatprep.mubr.msk.bf16.mxu0 %vm796_vm0, %v795_v0 }
 0x14a   :  { %v98_v16 = vpop.f32.mrf.mxu0 }
 0x14b   :  { %v875_v20 = vadd.f32 %v98_v16, %v43_v17 }
 0x14c   :  { %v686_v18 = vpop.f32.mrf.mxu0 }
 0x14e   :  { %v101_v19 = vpop.f32.mrf.mxu0 }
 0x14f   :  { %v877_v21 = vadd.f32 %v101_v19, %v43_v17 }
 0x150   :  { %v687_v22 = vpop.f32.mrf.mxu0 }
 0x151   :  { %v105_v23 = vpack.c.bf16 %v877_v21, %v875_v20 }
 0x153   :  { %693 = vmatmul.mubr.msk.bf16.vlgmr.msra.gmra.mxu1 %vm60_vm1, %v105_v23 }
 0x154   :  { %704 = vmatprep.mubr.msk.bf16.mxu1 %vm796_vm0, %v795_v0 }
 0x213   :  { %v151_v24 = vpop.f32.mrf.mxu1 }
 0x214   :  { %v172_v28 = vadd.f32 %v170_v25, %v151_v24  ;;  %v162_v37 = vadd.f32 %v161_v34, %v151_v24 }
 0x215   :  { %v694_v26 = vpop.f32.mrf.mxu1 }
 0x217   :  { %v154_v27 = vpop.f32.mrf.mxu1 }
 0x218   :  { %v173_v29 = vadd.f32 %v170_v25, %v154_v27  ;;  %v163_v36 = vadd.f32 %v161_v34, %v154_v27  ;;  %v312_v25 = vsub.s32 4, %v861_v11 }
 0x219   :  { %v695_v30 = vpop.f32.mrf.mxu1 }
 0x21a   :  { %v185_v31 = vpack.c.bf16 %v173_v29, %v172_v28  ;;  %v184_v38 = vpack.c.bf16 %v163_v36, %v162_v37  ;;  %v313_v26 = vrot.slane %v865_v13, %v312_v25 }
 0x21c   :  { %187 = vrot.lane.b32.xlu1 %v185_v31, %s798_s1 }
 0x28e   :  { %v188_v33 = vpop.permute.xlu1 %187 }
 0x28f   :  { %v193_v35 = vsel %vm60_vm1, %v188_v33, 0 }
 0x290   :  { %697 = vmatpush3.bf16.xpose.msra.mxu0 %v193_v35 }
 0x291   :  { %708 = vmatprep.subr.bf16.mxu0 %v795_v0 }
 0x297   :  { %699 = vmatmul.mubr.msk.bf16.vlgmr.msra.gmra.mxu0 %vm60_vm1, %v184_v38 }
 0x298   :  { %712 = vmatprep.mubr.msk.bf16.mxu0 %vm796_vm0, %v795_v0 }
 0x357   :  { %v229_v40 = vpop.f32.mrf.mxu0 }
 0x358   :  { %v230_v41 = vadd.f32 %v229_v40, %v31_v39 }
 0x359   :  { %v700_v42 = vpop.f32.mrf.mxu0 }
 0x35a   :  { %v237_v44 = vsel %vm236_vm2, %v230_v41, -inf }
 0x35b   :  { %238 = vmax.xlane.f32.xlu0 %v237_v44  ;;  %v232_v45 = vpop.f32.mrf.mxu0 }
 0x35c   :  { %v233_v46 = vadd.f32 %v232_v45, %v32_v43 }
 0x35d   :  { %v701_v47 = vpop.f32.mrf.mxu0 }
 0x35e   :  { %v240_v48 = vsel %vm236_vm2, %v233_v46, -inf }
 0x35f   :  { %241 = vmax.xlane.f32.xlu1 %v240_v48 }
 0x371   :  { %179 = vrot.lane.b32.xlu0 %v177_v50, %s799_s30 }
 0x375   :  { %316 = vrot.lane.b32.xlu0 %v752_v8, %s797_s2 }
 0x379   :  { %314 = vrot.lane.b32.xlu0 %v753_v10, %s797_s2 }
 0x3e4   :  { %v239_v51 = vpop.xlane.xlu0 %238 }
 0x3e5   :  { %v243_v52 = vsub.f32 %v230_v41, %v239_v51 }
 0x3e7   :  { %v245_v53 = vmul.f32 1.442695, %v243_v52 }
 0x3e8   :  { %v242_v54 = vpop.xlane.xlu1 %241  ;;  %v180_v61 = vpop.permute.xlu0 %179 }
 0x3e9   :  { %754 = vpow2.f32 %v245_v53  ;;  %v244_v55 = vsub.f32 %v233_v46, %v242_v54  ;;  %v182_v62 = vadd.f32 %v180_v61, %v151_v24  ;;  %v183_v63 = vadd.f32 %v180_v61, %v154_v27 }
 0x3ea   :  { %v395_v53 = vsub.s32 5, %v861_v11 }
 0x3eb   :  { %v247_v56 = vmul.f32 1.442695, %v244_v55  ;;  %v260_v3 = vpack.c.bf16 %v183_v63, %v182_v62 }
 0x3ec   :  { %v317_v4 = vpop.permute.xlu0 %316 }
 0x3ed   :  { %756 = vpow2.f32 %v247_v56  ;;  %709 = vmatpush3.bf16.msra.mxu0 %v317_v4  ;;  %v396_v56 = vrot.slane %v865_v13, %v395_v53 }
 0x3ee   :  { %710 = vmatprep.subr.bf16.mxu0 %v795_v0 }
 0x3f0   :  { %v315_v17 = vpop.permute.xlu0 %314 }
 0x3f1   :  { %711 = vmatpush3.bf16.msra.mxu0 %v315_v17 }
 0x3f2   :  { %724 = vmatprep.subr.bf16.mxu0 %v795_v0 }
 0x3f6   :  { %v755_v57 = vpop.eup %754 }
 0x3f7   :  { %v249_v58 = vsel %vm236_vm2, %v755_v57, 0.0 }
 0x3f8   :  { %250 = vadd.xlane.f32.xlu1 %v249_v58 }
 0x3fa   :  { %v757_v59 = vpop.eup %756 }
 0x3fb   :  { %v252_v60 = vsel %vm236_vm2, %v757_v59, 0.0 }
 0x3fc   :  { %253 = vadd.xlane.f32.xlu1 %v252_v60 }
 0x40d   :  { %262 = vrot.lane.b32.xlu1 %v260_v3, %s799_s30 }
 0x481   :  { %v251_v5 = vpop.xlane.xlu1 %250 }
 0x482   :  { %758 = vrcp.f32 %v251_v5 }
 0x485   :  { %v254_v6 = vpop.xlane.xlu1 %253 }
 0x486   :  { %760 = vrcp.f32 %v254_v6 }
 0x489   :  { %v263_v7 = vpop.permute.xlu1 %262 }
 0x48a   :  { %703 = vmatpush3.bf16.msra.mxu1 %v263_v7  ;;  %v408_v7 = vsub.s32 7, %v861_v11 }
 0x48b   :  { %716 = vmatprep.subr.bf16.mxu1 %v795_v0 }
 0x48f   :  { %v759_v8 = vpop.eup %758 }
 0x490   :  { %v257_v10 = vmul.f32 %v759_v8, %v755_v57  ;;  %v401_v57 = vsub.s32 6, %v861_v11  ;;  %v409_v8 = vrot.slane %v865_v13, %v408_v7 }
 0x492   :  { %v402_v61 = vrot.slane %v865_v13, %v401_v57 }
 0x493   :  { %v761_v9 = vpop.eup %760 }
 0x494   :  { %v258_v14 = vmul.f32 %v761_v9, %v757_v59 }
 0x496   :  { %v259_v16 = vpack.c.bf16 %v258_v14, %v257_v10 }
 0x498   :  { %705 = vmatmul.mubr.msk.bf16.vlgmr.msra.gmra.mxu1 %vm236_vm2, %v259_v16 }
 0x499   :  { %717 = vmatpush3.bf16.msra.mxu1 %v832_v1  ;;  %720 = vmatprep.mubr.msk.bf16.mxu1 %vm796_vm0, %v795_v0 }
 0x49a   :  { %718 = vmatprep.subr.bf16.mxu1 %v795_v0 }
 0x49d   :  { %719 = vmatpush3.bf16.msra.mxu1 %v839_v2 }
 0x49e   :  { %732 = vmatprep.subr.bf16.mxu1 %v795_v0 }
 0x558   :  { %v302_v18 = vpop.f32.mrf.mxu1 }
 0x55a   :  { %v706_v19 = vpop.f32.mrf.mxu1 }
 0x55c   :  { %v305_v22 = vpop.f32.mrf.mxu1 }
 0x55d   :  { %v309_v23 = vpack.c.bf16 %v305_v22, %v302_v18 }
 0x55e   :  { %v707_v24 = vpop.f32.mrf.mxu1 }
 0x55f   :  { %713 = vmatmul.mubr.msk.bf16.vlgmr.msra.gmra.mxu0 %vm60_vm1, %v309_v23  ;;  %v946_v24 = vld [vmem:[#allocation2 + $0x8] sm:$0xff] }
 0x560   :  { %728 = vmatprep.mubr.msk.bf16.mxu0 %vm796_vm0, %v795_v0 }
 0x61f   :  { %v357_v27 = vpop.f32.mrf.mxu0 }
 0x620   :  { %v358_v28 = vadd.f32 %v357_v27, %v313_v26 }
 0x621   :  { %v714_v29 = vpop.f32.mrf.mxu0 }
 0x622   :  { %v364_v30 = vadd.f32 %v358_v28, %v875_v20 }
 0x623   :  { %v360_v31 = vpop.f32.mrf.mxu0 }
 0x624   :  { %v361_v33 = vadd.f32 %v360_v31, %v313_v26  ;;  %v366_v34 = vsel %vm60_vm1, %v364_v30, 0.0  ;;  %v462_v26 = vrot.slane %v946_v24, %v42_v15 }
 0x625   :  { %367 = vadd.xlane.f32.xlu0 %v366_v34  ;;  %v715_v35 = vpop.f32.mrf.mxu0 }
 0x626   :  { %v365_v36 = vadd.f32 %v361_v33, %v877_v21 }
 0x628   :  { %v369_v37 = vsel %vm60_vm1, %v365_v36, 0.0 }
 0x629   :  { %370 = vadd.xlane.f32.xlu1 %v369_v37 }
 0x63a   :  { %465 = vrot.lane.b32.xlu1 %v832_v1, %s798_s1 }
 0x6ae   :  { %v368_v38 = vpop.xlane.xlu0 %367 }
 0x6af   :  { %v373_v39 = vmul.f32 0.03125, %v368_v38 }
 0x6b1   :  { %v375_v40 = vsub.f32 %v364_v30, %v373_v39 }
 0x6b2   :  { %v371_v41 = vpop.xlane.xlu1 %370 }
 0x6b3   :  { %v374_v42 = vmul.f32 0.03125, %v371_v41  ;;  %v377_v20 = vmul.f32 %v375_v40, %v375_v40 }
 0x6b5   :  { %v376_v43 = vsub.f32 %v365_v36, %v374_v42  ;;  %v379_v44 = vsel %vm60_vm1, %v377_v20, 0.0 }
 0x6b6   :  { %380 = vadd.xlane.f32.xlu0 %v379_v44  ;;  %v466_v5 = vpop.permute.xlu1 %465 }
 0x6b7   :  { %v378_v45 = vmul.f32 %v376_v43, %v376_v43  ;;  %725 = vmatpush3.bf16.msra.mxu0 %v466_v5 }
 0x6b8   :  { %726 = vmatprep.subr.bf16.mxu0 %v795_v0 }
 0x6b9   :  { %v382_v46 = vsel %vm60_vm1, %v378_v45, 0.0 }
 0x6ba   :  { %383 = vadd.xlane.f32.xlu0 %v382_v46 }
 0x6d0   :  { %463 = vrot.lane.b32.xlu0 %v839_v2, %s798_s1 }
 0x73f   :  { %v381_v21 = vpop.xlane.xlu0 %380 }
 0x740   :  { %v385_v47 = vmul.f32 0.03125, %v381_v21 }
 0x742   :  { %v387_v48 = vadd.f32 1e-05, %v385_v47 }
 0x743   :  { %v384_v50 = vpop.xlane.xlu0 %383 }
 0x744   :  { %762 = vrsqrt.f32 %v387_v48  ;;  %v386_v51 = vmul.f32 0.03125, %v384_v50 }
 0x746   :  { %v388_v52 = vadd.f32 1e-05, %v386_v51 }
 0x747   :  { %v464_v6 = vpop.permute.xlu0 %463 }
 0x748   :  { %764 = vrsqrt.f32 %v388_v52  ;;  %727 = vmatpush3.bf16.msra.mxu0 %v464_v6 }
 0x751   :  { %v763_v54 = vpop.eup %762 }
 0x752   :  { %v391_v55 = vmul.f32 %v763_v54, %v375_v40 }
 0x754   :  { %v397_v60 = vmul.f32 %v396_v56, %v391_v55 }
 0x755   :  { %v765_v58 = vpop.eup %764 }
 0x756   :  { %v392_v59 = vmul.f32 %v765_v58, %v376_v43  ;;  %v403_v63 = vadd.f32 %v402_v61, %v397_v60 }
 0x758   :  { %v398_v62 = vmul.f32 %v396_v56, %v392_v59 }
 0x75a   :  { %v404_v3 = vadd.f32 %v402_v61, %v398_v62 }
 0x75c   :  { %v405_v4 = vpack.c.bf16 %v404_v3, %v403_v63 }
 0x75e   :  { %721 = vmatmul.mubr.msk.bf16.vlgmr.msra.gmra.mxu1 %vm60_vm1, %v405_v4 }
 0x75f   :  { %736 = vmatprep.mubr.msk.bf16.mxu1 %vm796_vm0, %v795_v0 }
 0x81e   :  { %v449_v9 = vpop.f32.mrf.mxu1 }
 0x81f   :  { %v450_v14 = vadd.f32 %v449_v9, %v409_v8 }
 0x820   :  { %v722_v10 = vpop.f32.mrf.mxu1 }
 0x821   :  { %v456_v19 = vmax.f32 %v450_v14, 0.0 }
 0x822   :  { %v452_v16 = vpop.f32.mrf.mxu1 }
 0x823   :  { %v453_v17 = vadd.f32 %v452_v16, %v409_v8 }
 0x824   :  { %v723_v18 = vpop.f32.mrf.mxu1 }
 0x825   :  { %v457_v22 = vmax.f32 %v453_v17, 0.0 }
 0x827   :  { %v458_v23 = vpack.c.bf16 %v457_v22, %v456_v19  ;;  %v574_v19 = vrot.slane %v946_v24, %v176_v49 }
 0x829   :  { %729 = vmatmul.mubr.msk.bf16.vlgmr.msra.gmra.mxu0 %vm60_vm1, %v458_v23 }
 0x8e9   :  { %v506_v27 = vpop.f32.mrf.mxu0 }
 0x8ea   :  { %v507_v28 = vadd.f32 %v506_v27, %v462_v26 }
 0x8eb   :  { %v730_v13 = vpop.f32.mrf.mxu0 }
 0x8ec   :  { %v513_v29 = vadd.f32 %v507_v28, %v403_v63 }
 0x8ed   :  { %v509_v30 = vpop.f32.mrf.mxu0 }
 0x8ee   :  { %v510_v31 = vadd.f32 %v509_v30, %v462_v26  ;;  %v515_v33 = vsel %vm60_vm1, %v513_v29, 0.0  ;;  %v628_v26 = vrot.slane %v946_v24, %v312_v25 }
 0x8ef   :  { %516 = vadd.xlane.f32.xlu1 %v515_v33  ;;  %v731_v34 = vpop.f32.mrf.mxu0  ;;  %v637_v33 = vrot.slane %v946_v24, %v395_v53 }
 0x8f0   :  { %v514_v35 = vadd.f32 %v510_v31, %v404_v3 }
 0x8f2   :  { %v518_v36 = vsel %vm60_vm1, %v514_v35, 0.0 }
 0x8f3   :  { %519 = vadd.xlane.f32.xlu0 %v518_v36 }
 0x978   :  { %v517_v37 = vpop.xlane.xlu1 %516 }
 0x979   :  { %v521_v38 = vmul.f32 0.03125, %v517_v37 }
 0x97b   :  { %v523_v39 = vsub.f32 %v513_v29, %v521_v38 }
 0x97c   :  { %v520_v40 = vpop.xlane.xlu0 %519 }
 0x97d   :  { %v522_v41 = vmul.f32 0.03125, %v520_v40  ;;  %v525_v15 = vmul.f32 %v523_v39, %v523_v39 }
 0x97f   :  { %v524_v42 = vsub.f32 %v514_v35, %v522_v41  ;;  %v527_v20 = vsel %vm60_vm1, %v525_v15, 0.0 }
 0x980   :  { %528 = vadd.xlane.f32.xlu1 %v527_v20 }
 0x981   :  { %v526_v43 = vmul.f32 %v524_v42, %v524_v42 }
 0x983   :  { %v530_v44 = vsel %vm60_vm1, %v526_v43, 0.0 }
 0x984   :  { %531 = vadd.xlane.f32.xlu0 %v530_v44 }
 0x991   :  { %577 = vrot.lane.b32.xlu1 %v832_v1, %s799_s30  ;;  %v544_v1 = vrot.slane %v946_v24, %v160_v32 }
 0x99a   :  { %575 = vrot.lane.b32.xlu0 %v839_v2, %s799_s30  ;;  %v550_v2 = vrot.slane %v946_v24, %v166_v12 }
 0xa09   :  { %v529_v45 = vpop.xlane.xlu1 %528 }
 0xa0a   :  { %v533_v46 = vmul.f32 0.03125, %v529_v45 }
 0xa0c   :  { %v535_v21 = vadd.f32 1e-05, %v533_v46 }
 0xa0d   :  { %v532_v47 = vpop.xlane.xlu0 %531  ;;  %v578_v48 = vpop.permute.xlu1 %577 }
 0xa0e   :  { %766 = vrsqrt.f32 %v535_v21  ;;  %v534_v50 = vmul.f32 0.03125, %v532_v47  ;;  %733 = vmatpush3.bf16.msra.mxu1 %v578_v48 }
 0xa0f   :  { %734 = vmatprep.subr.bf16.mxu1 %v795_v0 }
 0xa10   :  { %v536_v51 = vadd.f32 1e-05, %v534_v50 }
 0xa11   :  { %v576_v52 = vpop.permute.xlu0 %575 }
 0xa12   :  { %768 = vrsqrt.f32 %v536_v51  ;;  %735 = vmatpush3.bf16.msra.mxu1 %v576_v52 }
 0xa1b   :  { %v767_v54 = vpop.eup %766 }
 0xa1c   :  { %v539_v55 = vmul.f32 %v767_v54, %v523_v39 }
 0xa1e   :  { %v545_v56 = vmul.f32 %v544_v1, %v539_v55 }
 0xa1f   :  { %v769_v57 = vpop.eup %768 }
 0xa20   :  { %v551_v58 = vadd.f32 %v550_v2, %v545_v56  ;;  %v540_v59 = vmul.f32 %v769_v57, %v524_v42 }
 0xa22   :  { %v553_v0 = vsel %vm60_vm1, %v551_v58, 0.0  ;;  %v546_v60 = vmul.f32 %v544_v1, %v540_v59 }
 0xa23   :  { %v554_v61 = vrot.slane %v553_v0, 4 }
 0xa24   :  { %v552_v62 = vadd.f32 %v550_v2, %v546_v60 }
 0xa25   :  { %v555_v63 = vadd.f32 %v554_v61, %v553_v0 }
 0xa26   :  { %v560_v3 = vsel %vm60_vm1, %v552_v62, 0.0 }
 0xa27   :  { %v561_v4 = vrot.slane %v560_v3, 4  ;;  %v556_v32 = vrot.slane %v555_v63, 2 }
 0xa29   :  { %v557_v5 = vadd.f32 %v556_v32, %v555_v63  ;;  %v562_v6 = vadd.f32 %v561_v4, %v560_v3 }
 0xa2b   :  { %v563_v7 = vrot.slane %v562_v6, 2  ;;  %v558_v8 = vrot.slane %v557_v5, 1 }
 0xa2d   :  { %v564_v12 = vadd.f32 %v563_v7, %v562_v6  ;;  %v559_v10 = vadd.f32 %v558_v8, %v557_v5 }
 0xa2f   :  { %v565_v9 = vrot.slane %v564_v12, 1 }
 0xa31   :  { %v566_v14 = vadd.f32 %v565_v9, %v564_v12 }
 0xa33   :  { %v568_v16 = vsel %vm567_vm3, %v559_v10, %v566_v14 }
 0xa34   :  { %v569_v17 = vmul.f32 0.125, %v568_v16 }
 0xa36   :  { %v570_v18 = vpack.c.bf16 %v569_v17, %v569_v17 }
 0xa38   :  { %737 = vmatmul.mubr.msk.bf16.vlgmr.msra.gmra.mxu1 %vm60_vm1, %v570_v18 }
 0xaf8   :  { %v618_v22 = vpop.f32.mrf.mxu1 }
 0xaf9   :  { %v619_v23 = vadd.f32 %v618_v22, %v574_v19 }
 0xafa   :  { %v738_v27 = vpop.f32.mrf.mxu1 }
 0xafb   :  { %v624_v28 = vmax.f32 %v619_v23, 0.0 }
 0xafc   :  { %v621_v13 = vpop.f32.mrf.mxu1 }
 0xafd   :  { %v629_v29 = vmul.f32 %v628_v26, %v624_v28 }
 0xafe   :  { %v739_v30 = vpop.f32.mrf.mxu1 }
 0xaff   :  { %v631_v31 = vsel %vm630_vm4, %v629_v29, 0.0 }
 0xb00   :  { %632 = vadd.xlane.f32.xlu1 %v631_v31 }
 0xb89   :  { %v633_v49 = vpop.xlane.xlu1 %632 }
 0xb8a   :  { %v638_v34 = vadd.f32 %v637_v33, %v633_v49 }
 0xb8c   :  { %640 = vst.msk [vmem:[%s984_s3] sm:$0x3] %vm639_vm5, %v638_v34 }
 0xb8d   :  { %645 = vsyncpa [#allocation3], 1 }

</bundles_post_ra>
